<compile_context>
chip_gen: v7x
topology: tpu7x:2x2x1
jax: 0.10.0
libtpu: 0.0.40
codegen_flags: <defaults>
</compile_context>

<pallas_src>
import functools

import jax
import jax.numpy as jnp
from jax.experimental import pallas as pl
from jax.experimental.pallas import tpu as pltpu

LANE = 128     # lane width / MXU column tile
SUBLANE = 8    # f32 sublane count
HIDDEN = 20


def _round_up(n, m):
    return ((n + m - 1) // m) * m


# ---------------------------------------------------------------------------
# Kernel: one batch tile, all three (padded) layers fused.
#   x_ref: (tm, D)   bf16
#   w_ref: (3, D, D) bf16   (layer-stacked, zero-padded weights, (in, out) layout)
#   b_ref: (3, 1, D) f32    (layer-stacked, zero-padded biases)
#   o_ref: (tm, D)   f32
# ---------------------------------------------------------------------------
def mlp_kernel(x_ref, w_ref, b_ref, o_ref):
    x = x_ref[...]  # bf16, already lane-dense

    h1 = jnp.dot(x, w_ref[0], preferred_element_type=jnp.float32) + b_ref[0]
    h1 = jnp.maximum(h1, 0.0).astype(x.dtype)          # ReLU in f32, cast for MXU

    h2 = jnp.dot(h1, w_ref[1], preferred_element_type=jnp.float32) + b_ref[1]
    h2 = jnp.maximum(h2, 0.0).astype(x.dtype)

    out = jnp.dot(h2, w_ref[2], preferred_element_type=jnp.float32) + b_ref[2]
    o_ref[...] = out.astype(o_ref.dtype)


# ---------------------------------------------------------------------------
# Parameter init (mimics nn.Linear's U(-1/sqrt(fan_in), 1/sqrt(fan_in))).
# ---------------------------------------------------------------------------
def init_params(key, input_size, output_size, hidden=HIDDEN):
    def linear(k, fan_in, fan_out):
        kw, kb = jax.random.split(k)
        bound = 1.0 / jnp.sqrt(fan_in)
        w = jax.random.uniform(kw, (fan_in, fan_out), jnp.float32, -bound, bound)
        b = jax.random.uniform(kb, (1, fan_out), jnp.float32, -bound, bound)
        return w, b

    k1, k2, k3 = jax.random.split(key, 3)
    w1, b1 = linear(k1, input_size, hidden)
    w2, b2 = linear(k2, hidden, hidden)
    w3, b3 = linear(k3, hidden, output_size)
    return (w1, b1, w2, b2, w3, b3)


def pack_params(params, input_size, output_size, hidden=HIDDEN):
    """Zero-pad every layer to (D, D)/(1, D), D = multiple of 128, and stack."""
    w1, b1, w2, b2, w3, b3 = params
    D = _round_up(max(input_size, hidden, output_size), LANE)

    def pad_w(w):
        k, f = w.shape
        return jnp.pad(w, ((0, D - k), (0, D - f)))

    def pad_b(b):
        b = b.reshape(1, -1)
        return jnp.pad(b, ((0, 0), (0, D - b.shape[-1])))

    w_slab = jnp.stack([pad_w(w1), pad_w(w2), pad_w(w3)]).astype(jnp.bfloat16)
    b_slab = jnp.stack([pad_b(b1), pad_b(b2), pad_b(b3)]).astype(jnp.float32)
    return w_slab, b_slab


# ---------------------------------------------------------------------------
# Wrapper: pad x, launch the fused kernel, slice the result back.
# ---------------------------------------------------------------------------
@functools.partial(jax.jit, static_argnames=("output_size",))
def mlp_forward(x, w_slab, b_slab, *, output_size):
    batch, input_size = x.shape
    _, D, _ = w_slab.shape

    # Batch tiling: sublane-aligned; cap the tile so large batches get a real
    # grid that the ("parallel",) semantics can shard across v7x's 2 TCs.
    tm_cap = 256
    pb = _round_up(batch, SUBLANE)
    if pb > tm_cap:
        pb = _round_up(batch, tm_cap)
        tm = tm_cap
    else:
        tm = pb
    grid = (pb // tm,)

    x_p = jnp.pad(x, ((0, pb - batch), (0, D - input_size))).astype(jnp.bfloat16)

    out_p = pl.pallas_call(
        mlp_kernel,
        out_shape=jax.ShapeDtypeStruct((pb, D), jnp.float32),
        grid_spec=pltpu.PrefetchScalarGridSpec(
            num_scalar_prefetch=0,
            grid=grid,
            in_specs=[
                pl.BlockSpec((tm, D), lambda i: (i, 0)),
                pl.BlockSpec((3, D, D), lambda i: (0, 0, 0)),  # weights: VMEM-resident
                pl.BlockSpec((3, 1, D), lambda i: (0, 0, 0)),  # biases: VMEM-resident
            ],
            out_specs=pl.BlockSpec((tm, D), lambda i: (i, 0)),
        ),
        compiler_params=pltpu.CompilerParams(
            dimension_semantics=("parallel",)),
    )(x_p, w_slab, b_slab)

    return out_p[:batch, :output_size]


# ---------------------------------------------------------------------------
# Pure-JAX f32 reference (matches the PyTorch module's forward).
# ---------------------------------------------------------------------------
def mlp_reference(x, params):
    w1, b1, w2, b2, w3, b3 = params
    h1 = jnp.maximum(x @ w1 + b1, 0.0)
    h2 = jnp.maximum(h1 @ w2 + b2, 0.0)
    return h2 @ w3 + b3


if __name__ == "__main__":
    key = jax.random.PRNGKey(0)
    kx, kp = jax.random.split(key)

    batch, input_size, output_size = 8, 32, 10
    x = jax.random.normal(kx, (batch, input_size), jnp.float32)
    params = init_params(kp, input_size, output_size)
    w_slab, b_slab = pack_params(params, input_size, output_size)

    out = mlp_forward(x, w_slab, b_slab, output_size=output_size)
    jax.block_until_ready(out)

    ref = mlp_reference(x, params)
    assert out.shape == (batch, output_size)
    # bf16 MXU operands with f32 accumulation -> compare at bf16-level tolerance.
    assert jnp.allclose(out, ref, atol=3e-2, rtol=3e-2), float(jnp.max(jnp.abs(out - ref)))

    print("KERNEL_OK")
</pallas_src>

<mosaic_0001>
module attributes {stable_mosaic.version = 11 : i64} {
  func.func @mlp_kernel(%arg0: i32, %arg1: memref<8x128xbf16, #tpu.memory_space<vmem>>, %arg2: memref<3x128x128xbf16, #tpu.memory_space<vmem>>, %arg3: memref<3x1x128xf32, #tpu.memory_space<vmem>>, %arg4: memref<8x128xf32, #tpu.memory_space<vmem>>) attributes {dimension_semantics = [#tpu.dimension_semantics<parallel>], iteration_bounds = array<i64: 1>, scalar_prefetch = 0 : i64, scratch_operands = 0 : i64, tpu.core_type = #tpu.core_type<tc>, window_params = [{transform_indices = @transform_0, window_bounds = array<i64: 8, 128>}, {pipeline_mode = #tpu.pipeline_mode<synchronous>, transform_indices = @transform_1, window_bounds = array<i64: 3, 128, 128>}, {pipeline_mode = #tpu.pipeline_mode<synchronous>, transform_indices = @transform_2, window_bounds = array<i64: 3, 1, 128>}, {transform_indices = @transform_3, window_bounds = array<i64: 8, 128>}]} {
    %c0 = arith.constant 0 : index
    %c0_0 = arith.constant 0 : index
    %0 = vector.load %arg1[%c0, %c0_0] : memref<8x128xbf16, #tpu.memory_space<vmem>>, vector<8x128xbf16>
    %c0_1 = arith.constant 0 : index
    %c0_2 = arith.constant 0 : index
    %c0_3 = arith.constant 0 : index
    %1 = vector.load %arg2[%c0_1, %c0_2, %c0_3] : memref<3x128x128xbf16, #tpu.memory_space<vmem>>, vector<1x128x128xbf16>
    %2 = vector.shape_cast %1 : vector<1x128x128xbf16> to vector<128x128xbf16>
    %cst = arith.constant dense<0.000000e+00> : vector<8x128xf32>
    %3 = tpu.matmul %0, %2, %cst {dimension_numbers = #tpu.dot_dimension_numbers<[1], [0], [0], [1], [0, 0, 1, 1], [], []>} : vector<8x128xbf16>, vector<128x128xbf16>, vector<8x128xf32> -> vector<8x128xf32>
    %c0_4 = arith.constant 0 : index
    %c0_5 = arith.constant 0 : index
    %c0_6 = arith.constant 0 : index
    %4 = vector.load %arg3[%c0_4, %c0_5, %c0_6] : memref<3x1x128xf32, #tpu.memory_space<vmem>>, vector<1x1x128xf32>
    %5 = vector.shape_cast %4 : vector<1x1x128xf32> to vector<1x128xf32>
    %6 = vector.broadcast %5 : vector<1x128xf32> to vector<8x128xf32>
    %7 = arith.addf %3, %6 : vector<8x128xf32>
    %cst_7 = arith.constant 0.000000e+00 : f32
    %8 = vector.broadcast %cst_7 : f32 to vector<8x128xf32>
    %9 = arith.maximumf %7, %8 : vector<8x128xf32>
    %10 = arith.truncf %9 : vector<8x128xf32> to vector<8x128xbf16>
    %c1 = arith.constant 1 : index
    %c0_8 = arith.constant 0 : index
    %c0_9 = arith.constant 0 : index
    %11 = vector.load %arg2[%c1, %c0_8, %c0_9] : memref<3x128x128xbf16, #tpu.memory_space<vmem>>, vector<1x128x128xbf16>
    %12 = vector.shape_cast %11 : vector<1x128x128xbf16> to vector<128x128xbf16>
    %cst_10 = arith.constant dense<0.000000e+00> : vector<8x128xf32>
    %13 = tpu.matmul %10, %12, %cst_10 {dimension_numbers = #tpu.dot_dimension_numbers<[1], [0], [0], [1], [0, 0, 1, 1], [], []>} : vector<8x128xbf16>, vector<128x128xbf16>, vector<8x128xf32> -> vector<8x128xf32>
    %c1_11 = arith.constant 1 : index
    %c0_12 = arith.constant 0 : index
    %c0_13 = arith.constant 0 : index
    %14 = vector.load %arg3[%c1_11, %c0_12, %c0_13] : memref<3x1x128xf32, #tpu.memory_space<vmem>>, vector<1x1x128xf32>
    %15 = vector.shape_cast %14 : vector<1x1x128xf32> to vector<1x128xf32>
    %16 = vector.broadcast %15 : vector<1x128xf32> to vector<8x128xf32>
    %17 = arith.addf %13, %16 : vector<8x128xf32>
    %cst_14 = arith.constant 0.000000e+00 : f32
    %18 = vector.broadcast %cst_14 : f32 to vector<8x128xf32>
    %19 = arith.maximumf %17, %18 : vector<8x128xf32>
    %20 = arith.truncf %19 : vector<8x128xf32> to vector<8x128xbf16>
    %c2 = arith.constant 2 : index
    %c0_15 = arith.constant 0 : index
    %c0_16 = arith.constant 0 : index
    %21 = vector.load %arg2[%c2, %c0_15, %c0_16] : memref<3x128x128xbf16, #tpu.memory_space<vmem>>, vector<1x128x128xbf16>
    %22 = vector.shape_cast %21 : vector<1x128x128xbf16> to vector<128x128xbf16>
    %cst_17 = arith.constant dense<0.000000e+00> : vector<8x128xf32>
    %23 = tpu.matmul %20, %22, %cst_17 {dimension_numbers = #tpu.dot_dimension_numbers<[1], [0], [0], [1], [0, 0, 1, 1], [], []>} : vector<8x128xbf16>, vector<128x128xbf16>, vector<8x128xf32> -> vector<8x128xf32>
    %c2_18 = arith.constant 2 : index
    %c0_19 = arith.constant 0 : index
    %c0_20 = arith.constant 0 : index
    %24 = vector.load %arg3[%c2_18, %c0_19, %c0_20] : memref<3x1x128xf32, #tpu.memory_space<vmem>>, vector<1x1x128xf32>
    %25 = vector.shape_cast %24 : vector<1x1x128xf32> to vector<1x128xf32>
    %26 = vector.broadcast %25 : vector<1x128xf32> to vector<8x128xf32>
    %27 = arith.addf %23, %26 : vector<8x128xf32>
    %c0_21 = arith.constant 0 : index
    %c0_22 = arith.constant 0 : index
    %28 = vector.load %arg4[%c0_21, %c0_22] : memref<8x128xf32, #tpu.memory_space<vmem>>, vector<8x128xf32>
    tpu.vector_store %arg4[%c0_21, %c0_22], %27 {strides = array<i32>} : memref<8x128xf32, #tpu.memory_space<vmem>>, vector<8x128xf32>,
    return
  }
  func.func @transform_0(%arg0: i32) -> (i32, i32) {
    %c0_i32 = arith.constant 0 : i32
    %c0_i32_0 = arith.constant 0 : i32
    return %arg0, %c0_i32 : i32, i32
  }
  func.func @transform_1(%arg0: i32) -> (i32, i32, i32) {
    %c0_i32 = arith.constant 0 : i32
    %c0_i32_0 = arith.constant 0 : i32
    %c0_i32_1 = arith.constant 0 : i32
    %c0_i32_2 = arith.constant 0 : i32
    return %c0_i32, %c0_i32_0, %c0_i32_1 : i32, i32, i32
  }
  func.func @transform_2(%arg0: i32) -> (i32, i32, i32) {
    %c0_i32 = arith.constant 0 : i32
    %c0_i32_0 = arith.constant 0 : i32
    %c0_i32_1 = arith.constant 0 : i32
    %c0_i32_2 = arith.constant 0 : i32
    return %c0_i32, %c0_i32_0, %c0_i32_1 : i32, i32, i32
  }
  func.func @transform_3(%arg0: i32) -> (i32, i32) {
    %c0_i32 = arith.constant 0 : i32
    %c0_i32_0 = arith.constant 0 : i32
    return %arg0, %c0_i32 : i32, i32
  }
}

</mosaic_0001>

<bundles_post_ra>
// kernel: mlp_forward.1
= control target key start
LH: loop header
LB: loop body
LE: loop exit
PB: predicated region body
PF: predicated region fallthrough
CT: control target
= control target key end

     0   :  { %8 = vsyncpa [#allocation3], 0  ;;  %s674_s0 = inlined_call_operand.vmem [shape: bf16[8,128], index: 0, kind: input, shape index: {}]   ;;  %s675_s1 = inlined_call_operand.hbm [shape: bf16[3,128,128], index: 1, kind: input, shape index: {}]   ;;  %s676_s2 = inlined_call_operand.vmem [shape: f32[3,1,128], index: 2, kind: input, shape index: {}]   ;;  %s677_s3 = inlined_call_operand.hbm [shape: f32[8,128], index: 3, kind: output, shape index: {}]  }
   0x1   :  { %9 = vsyncpa [#allocation4], 0  ;;  %s582_s12 = smov [#allocation2]   ;;  %s534_s16 = scalar_lea.hbm %s675_s1, 3072 }
   0x2   :  { %s17_s13 = sshll.u32 %s582_s12, 4  ;;  %p535_p0 = scmp.ne.s32.totalorder %s675_s1, %s534_s16  ;;  %s18_s13 = int_to_ptr.vmem [resolvable:$true] %s17_s13 }
   0x3   :  { %p538_p1 = scmp.lt.u32.totalorder %s534_s16, %s675_s1 }
   0x5   :  { %p540_p2 = pnand %p538_p1, %p535_p0 }
   0x7   :  { %543 = shalt.err (!%p540_p2)
}
   0x8   :  { %s544_s21 = scalar_lea.vmem %s18_s13, 3072  ;;  %p549_p4 = scmp.lt.s32.totalorder %s18_s13, %s18_s13 }
   0x9   :  { %p545_p3 = scmp.ne.s32.totalorder %s18_s13, %s544_s21  ;;  %p550_p5 = scmp.lt.s32.totalorder %s544_s21, %s544_s21 }
   0xb   :  { %p551_p6 = por %p550_p5, %p549_p4 }
   0xd   :  { %p552_p7 = pnand %p551_p6, %p545_p3 }
   0xf   :  { %555 = shalt.err (!%p552_p7)
}
  0x10   :  { %s583_s22 = smov 64   ;;  %s584_s23 = smov 4  }
  0x11   :  { %23 = dma.hbm_to_vmem [thread:$0]  %s675_s1, 3072, %s18_s13, [#allocation3], %s583_s22, %s583_s22, %s584_s23  }
  0x12   :  { %578 = dma.done.wait [#allocation3], 3072  }
  0x13   :  { %579 = vsyncadd [#allocation3], 4294964224  ;;  %v585_v0 = vmov 0.0   ;;  %vm586_vm0 = vmmov 0   ;;  %v510_v1 = vld [vmem:[#allocation2] sm:$0xff]   ;;  %v511_v2 = vld [vmem:[#allocation2 + $0x8] sm:$0xff]  }
  0x14   :  { %444 = vmatprep.subr.bf16.mxu0 %v585_v0  ;;  %460 = vmatprep.mubr.msk.bf16.mxu0 %vm586_vm0, %v585_v0  ;;  %v512_v3 = vld [vmem:[#allocation2 + $0x10] sm:$0xff]   ;;  %v518_v4 = vld [vmem:[#allocation2 + $0x40] sm:$0xff]   ;;  %v513_v5 = vld [vmem:[#allocation2 + $0x18] sm:$0xff]   ;;  %s587_s5 = smov [#allocation5]  }
  0x15   :  { %464 = vmatprep.subr.bf16.mxu1 %v585_v0  ;;  %480 = vmatprep.mubr.msk.bf16.mxu1 %vm586_vm0, %v585_v0  ;;  %v519_v6 = vld [vmem:[#allocation2 + $0x48] sm:$0xff]   ;;  %v514_v7 = vld [vmem:[#allocation2 + $0x20] sm:$0xff]   ;;  %v520_v8 = vld [vmem:[#allocation2 + $0x50] sm:$0xff]   ;;  %s379_s6 = sshll.u32 %s587_s5, 4  ;;  %s380_s6 = int_to_ptr.vmem [resolvable:$true] %s379_s6 }
  0x16   :  { %445 = vmatpush3.bf16.msra.mxu0 %v510_v1  ;;  %465 = vmatpush3.bf16.msra.mxu1 %v518_v4  ;;  %v515_v9 = vld [vmem:[#allocation2 + $0x28] sm:$0xff]   ;;  %v521_v10 = vld [vmem:[#allocation2 + $0x58] sm:$0xff]   ;;  %v516_v11 = vld [vmem:[#allocation2 + $0x30] sm:$0xff]   ;;  %s556_s7 = scalar_lea.vmem %s380_s6, 128  ;;  %p561_p9 = scmp.lt.s32.totalorder %s380_s6, %s380_s6 }
  0x17   :  { %446 = vmatprep.subr.bf16.mxu0 %v585_v0  ;;  %466 = vmatprep.subr.bf16.mxu1 %v585_v0  ;;  %v522_v12 = vld [vmem:[#allocation2 + $0x60] sm:$0xff]   ;;  %v517_v13 = vld [vmem:[#allocation2 + $0x38] sm:$0xff]   ;;  %v523_v14 = vld [vmem:[#allocation2 + $0x68] sm:$0xff]   ;;  %p557_p8 = scmp.ne.s32.totalorder %s380_s6, %s556_s7  ;;  %p562_p10 = scmp.lt.s32.totalorder %s556_s7, %s556_s7 }
  0x18   :  { %v30_v15 = vld [vmem:[%s674_s0] sm:$0xf]  ;;  %v524_v16 = vld [vmem:[#allocation2 + $0x70] sm:$0xff]   ;;  %v525_v17 = vld [vmem:[#allocation2 + $0x78] sm:$0xff]  }
  0x19   :  { %v526_v18 = vld [vmem:[#allocation2 + $0x80] sm:$0xff]   ;;  %v527_v19 = vld [vmem:[#allocation2 + $0x88] sm:$0xff]   ;;  %v528_v20 = vld [vmem:[#allocation2 + $0x90] sm:$0xff]   ;;  %p563_p11 = por %p562_p10, %p561_p9 }
  0x1a   :  { %447 = vmatpush3.bf16.msra.mxu0 %v511_v2  ;;  %467 = vmatpush3.bf16.msra.mxu1 %v519_v6  ;;  %v529_v21 = vld [vmem:[#allocation2 + $0x98] sm:$0xff]   ;;  %v530_v22 = vld [vmem:[#allocation2 + $0xa0] sm:$0xff]   ;;  %v531_v23 = vld [vmem:[#allocation2 + $0xa8] sm:$0xff]  }
  0x1b   :  { %448 = vmatprep.subr.bf16.mxu0 %v585_v0  ;;  %468 = vmatprep.subr.bf16.mxu1 %v585_v0  ;;  %v388_v24 = vld [vmem:[%s676_s2] ss:$0 sm:$0xff]  ;;  %v532_v32 = vld [vmem:[#allocation2 + $0xb0] sm:$0xff]   ;;  %v533_v33 = vld [vmem:[#allocation2 + $0xb8] sm:$0xff]   ;;  %p564_p12 = pnand %p563_p11, %p557_p8 }
  0x1c   :  { %v398_v34 = vld [vmem:[%s676_s2 + $0x1] ss:$0 sm:$0xff]  ;;  %v408_v42 = vld [vmem:[%s676_s2 + $0x2] ss:$0 sm:$0xff] }
  0x1e   :  { %449 = vmatpush3.bf16.msra.mxu0 %v512_v3  ;;  %469 = vmatpush3.bf16.msra.mxu1 %v520_v8 }
  0x1f   :  { %450 = vmatprep.subr.bf16.mxu0 %v585_v0  ;;  %470 = vmatprep.subr.bf16.mxu1 %v585_v0 }
  0x22   :  { %451 = vmatpush3.bf16.msra.mxu0 %v513_v5  ;;  %471 = vmatpush3.bf16.msra.mxu1 %v521_v10 }
  0x23   :  { %452 = vmatprep.subr.bf16.mxu0 %v585_v0  ;;  %472 = vmatprep.subr.bf16.mxu1 %v585_v0 }
  0x26   :  { %453 = vmatpush3.bf16.msra.mxu0 %v514_v7  ;;  %473 = vmatpush3.bf16.msra.mxu1 %v522_v12 }
  0x27   :  { %454 = vmatprep.subr.bf16.mxu0 %v585_v0  ;;  %474 = vmatprep.subr.bf16.mxu1 %v585_v0 }
  0x2a   :  { %455 = vmatpush3.bf16.msra.mxu0 %v515_v9  ;;  %475 = vmatpush3.bf16.msra.mxu1 %v523_v14 }
  0x2b   :  { %456 = vmatprep.subr.bf16.mxu0 %v585_v0  ;;  %476 = vmatprep.subr.bf16.mxu1 %v585_v0 }
  0x2e   :  { %457 = vmatpush3.bf16.msra.mxu0 %v516_v11  ;;  %477 = vmatpush3.bf16.msra.mxu1 %v524_v16 }
  0x2f   :  { %458 = vmatprep.subr.bf16.mxu0 %v585_v0  ;;  %478 = vmatprep.subr.bf16.mxu1 %v585_v0 }
  0x32   :  { %459 = vmatpush3.bf16.msra.mxu0 %v517_v13  ;;  %479 = vmatpush3.bf16.msra.mxu1 %v525_v17 }
  0x33   :  { %484 = vmatprep.subr.bf16.mxu0 %v585_v0 }
  0x35   :  { %461 = vmatmul.mubr.bf16.vlgmr.msra.gmra.mrb[0].mxu0 %v30_v15 }
  0x36   :  { %500 = vmatprep.mubr.msk.bf16.mxu0 %vm586_vm0, %v585_v0  ;;  %485 = vmatpush3.bf16.msra.mxu0 %v526_v18 }
  0x37   :  { %486 = vmatprep.subr.bf16.mxu0 %v585_v0 }
  0x3a   :  { %487 = vmatpush3.bf16.msra.mxu0 %v527_v19 }
  0x3b   :  { %488 = vmatprep.subr.bf16.mxu0 %v585_v0 }
  0x3e   :  { %489 = vmatpush3.bf16.msra.mxu0 %v528_v20 }
  0x3f   :  { %490 = vmatprep.subr.bf16.mxu0 %v585_v0 }
  0x42   :  { %491 = vmatpush3.bf16.msra.mxu0 %v529_v21 }
  0x43   :  { %492 = vmatprep.subr.bf16.mxu0 %v585_v0 }
  0x46   :  { %493 = vmatpush3.bf16.msra.mxu0 %v530_v22 }
  0x47   :  { %494 = vmatprep.subr.bf16.mxu0 %v585_v0 }
  0x4a   :  { %495 = vmatpush3.bf16.msra.mxu0 %v531_v23 }
  0x4b   :  { %496 = vmatprep.subr.bf16.mxu0 %v585_v0 }
  0x4e   :  { %497 = vmatpush3.bf16.msra.mxu0 %v532_v32 }
  0x4f   :  { %498 = vmatprep.subr.bf16.mxu0 %v585_v0 }
  0x52   :  { %499 = vmatpush3.bf16.msra.mxu0 %v533_v33 }
 0x108   :  { %v136_v25 = vpop.f32.mrb[0].mxu0 }
 0x109   :  { %v137_v26 = vadd.f32 %v388_v24, %v136_v25  ;;  %v462_v27 = vpop.f32.mrb[1].mxu0 }
 0x10a   :  { %v139_v28 = vpop.f32.mrb[2].mxu0 }
 0x10b   :  { %v142_v29 = vmax.f32 %v137_v26, 0.0  ;;  %v463_v30 = vpop.f32.mrb[3].mxu0 }
 0x10d   :  { %v143_v31 = vpack.c.bf16 %v142_v29, %v142_v29 }
 0x10f   :  { %481 = vmatmul.mubr.bf16.vlgmr.msra.gmra.mrb[0].mxu1 %v143_v31 }
 0x1e2   :  { %v251_v35 = vpop.f32.mrb[0].mxu1 }
 0x1e3   :  { %v252_v36 = vadd.f32 %v398_v34, %v251_v35  ;;  %v482_v37 = vpop.f32.mrb[1].mxu1 }
 0x1e4   :  { %v254_v38 = vpop.f32.mrb[2].mxu1 }
 0x1e5   :  { %v257_v39 = vmax.f32 %v252_v36, 0.0  ;;  %v483_v40 = vpop.f32.mrb[3].mxu1 }
 0x1e7   :  { %v258_v41 = vpack.c.bf16 %v257_v39, %v257_v39 }
 0x1e9   :  { %501 = vmatmul.mubr.bf16.vlgmr.msra.gmra.mrb[4].mxu0 %v258_v41 }
 0x2bc   :  { %v366_v43 = vpop.f32.mrb[4].mxu0 }
 0x2bd   :  { %v367_v44 = vadd.f32 %v408_v42, %v366_v43  ;;  %v502_v45 = vpop.f32.mrb[5].mxu0 }
 0x2be   :  { %v369_v46 = vpop.f32.mrb[6].mxu0 }
 0x2bf   :  { %372 = vst [vmem:[#allocation5] sm:$0xff] %v367_v44  ;;  %v503_v47 = vpop.f32.mrb[7].mxu0 }
 0x2c0   :  { %567 = shalt.err (!%p564_p12)
}
 0x2c1   :  { %s568_s2 = scalar_lea.hbm %s677_s3, 128 }
 0x2c2   :  { %p569_p13 = scmp.ne.s32.totalorder %s677_s3, %s568_s2  ;;  %p572_p0 = scmp.lt.u32.totalorder %s568_s2, %s677_s3 }
 0x2c4   :  { %p574_p1 = pnand %p572_p0, %p569_p13 }
 0x2c6   :  { %577 = shalt.err (!%p574_p1)
}
 0x2c7   :  { %382 = dma.vmem_to_hbm [thread:$0]  %s380_s6, 128, %s677_s3, [#allocation4]  }
 0x2c8   :  { %580 = dma.done.wait [#allocation4], 128  }
 0x2c9   :  { %581 = vsyncadd [#allocation4], 4294967168 }
 0x2ca   :  { %386 = vsyncpa [#allocation3], 1 }
 0x2cb   :  { %387 = vsyncpa [#allocation4], 1 }

</bundles_post_ra>
